<compile_context>
chip_gen: v7x
topology: tpu7x:2x2x1
jax: 0.10.0
libtpu: 0.0.40
codegen_flags: <defaults>
</compile_context>

<pallas_src>
import jax
import jax.numpy as jnp
from jax import lax
from jax.experimental import pallas as pl
from jax.experimental.pallas import tpu as pltpu

# Synthetic "cfg" constants (deterministic, in-script).
MAX_DISPLACEMENT = 16            # cfg.DISP.MAX_DISPLACEMENT
NUM_CLASSES = 2                  # cfg.MODEL.NUM_CLASSES
C = MAX_DISPLACEMENT * NUM_CLASSES   # channel extent = 32
LANES = 128
G = LANES // C                   # batch rows packed per 128-lane row (= 4)
GC = G * C                       # = 128

# Row-groups per grid step.  TBr=4096 -> 16384 batch rows / step (2 MiB DMA),
# i.e. mid-range of the recommended 8K-32K batch tile.  Sweep 2048-8192 if tuning.
TBR_MAX = 4096


def _dispreg_kernel(x_ref, *o_refs):
    # x_ref : (TBr, GC)  -- TBr row-groups, each holding G batch rows of C channels.
    # o_refs: G refs of (1, TBr) -- o_refs[q][0, r] = result for batch (r0 + r)*G + q.
    x = x_ref[...].astype(jnp.float32)          # upcast in-register (v5e has no bf16 VPU)
    t = jnp.transpose(x)                        # (GC, TBr): native-shape XLU transpose
    # weight for sublane s: channel c = s % C, weight = c % maxdisp == s % maxdisp
    w = (lax.broadcasted_iota(jnp.int32, (GC, 1), 0) % MAX_DISPLACEMENT
         ).astype(jnp.float32)                  # tiny (GC,1); lane-broadcast in the mul
    y = t * w
    for q, o_ref in enumerate(o_refs):          # static unroll, G = 4
        # sublane-segment reduce: channels of batch-sub-index q live on sublanes
        # [q*C, (q+1)*C); sum them -> a lane-dense (1, TBr) row, full-block store.
        o_ref[...] = jnp.sum(y[q * C:(q + 1) * C, :], axis=0, keepdims=True)


def disparity_regression(x: jax.Array) -> jax.Array:
    """x: [B, maxdisp * NUM_CLASSES] (f32 or bf16) -> out: [B] float32."""
    B, Cin = x.shape
    assert Cin == C
    assert LANES % C == 0 and C % 8 == 0  # TODO(synk): generalize for C > 128 / non-divisor C

    # Rare fallback: the free [B, C] -> [B/G, G*C] view needs B % G == 0.
    # (Padding here copies x, but only triggers when B is not a multiple of 4;
    #  padded rows are zeros -> contribute 0 and are sliced off below.)
    if B % G:
        x = jnp.pad(x, ((0, G - B % G), (0, 0)))
    Bg = x.shape[0] // G
    xr = x.reshape(Bg, GC)                        # free bitcast reshape; no HBM transpose

    TBr = min(TBR_MAX, pl.cdiv(Bg, LANES) * LANES)  # multiple of 128 keeps transpose native
    nblk = pl.cdiv(Bg, TBr)                          # ragged last block; no input padding
    Np = nblk * TBr                                  # padded *output* allocation only (free)

    outs = pl.pallas_call(
        _dispreg_kernel,
        out_shape=tuple(jax.ShapeDtypeStruct((1, Np), jnp.float32) for _ in range(G)),
        grid_spec=pltpu.PrefetchScalarGridSpec(
            num_scalar_prefetch=0,
            grid=(nblk,),
            in_specs=[pl.BlockSpec((TBr, GC), lambda i: (i, 0))],
            out_specs=tuple(pl.BlockSpec((1, TBr), lambda i: (0, i)) for _ in range(G)),
        ),
        compiler_params=pltpu.CompilerParams(
            # batch-tile axis is independent -> shards across the 2 TCs on v7x
            dimension_semantics=("parallel",),
        ),
    )(xr)

    # outs[q][0, g] is the result for batch g*G + q; un-interleave (tiny, output-only).
    out2 = jnp.concatenate(outs, axis=0)          # (G, Np)
    return out2.T.reshape(-1)[:B]                 # [B], matches torch.sum(..., dim=1)


def disparity_regression_ref(x: jax.Array) -> jax.Array:
    disp = jnp.tile(
        jnp.arange(MAX_DISPLACEMENT, dtype=jnp.float32).reshape(1, MAX_DISPLACEMENT),
        (x.shape[0], NUM_CLASSES),
    )
    return jnp.sum(x.astype(jnp.float32) * disp, axis=1)


if __name__ == "__main__":
    key = jax.random.PRNGKey(0)
    B = 8
    x = jax.random.uniform(key, (B, C), dtype=jnp.float32)

    out = disparity_regression(x)
    out = jax.block_until_ready(out)

    ref = disparity_regression_ref(x)
    assert out.shape == (B,)
    assert jnp.allclose(out, ref, atol=1e-5, rtol=1e-5)
    print("KERNEL_OK")
</pallas_src>

<mosaic_0001>
module attributes {stable_mosaic.version = 11 : i64} {
  func.func @_dispreg_kernel(%arg0: i32, %arg1: memref<128x128xf32, #tpu.memory_space<vmem>>, %arg2: memref<1x128xf32, #tpu.memory_space<vmem>>, %arg3: memref<1x128xf32, #tpu.memory_space<vmem>>, %arg4: memref<1x128xf32, #tpu.memory_space<vmem>>, %arg5: memref<1x128xf32, #tpu.memory_space<vmem>>) attributes {dimension_semantics = [#tpu.dimension_semantics<parallel>], iteration_bounds = array<i64: 1>, scalar_prefetch = 0 : i64, scratch_operands = 0 : i64, tpu.core_type = #tpu.core_type<tc>, window_params = [{transform_indices = @transform_0, window_bounds = array<i64: 128, 128>}, {transform_indices = @transform_1, window_bounds = array<i64: 1, 128>}, {transform_indices = @transform_2, window_bounds = array<i64: 1, 128>}, {transform_indices = @transform_3, window_bounds = array<i64: 1, 128>}, {transform_indices = @transform_4, window_bounds = array<i64: 1, 128>}]} {
    %c0 = arith.constant 0 : index
    %c0_0 = arith.constant 0 : index
    %0 = vector.load %arg1[%c0, %c0_0] : memref<128x128xf32, #tpu.memory_space<vmem>>, vector<128x128xf32>
    %1 = tpu.transpose %0, [1, 0] : vector<128x128xf32> -> vector<128x128xf32>
    %2 = tpu.iota {dimensions = array<i32: 0>} : vector<128x1xi32>
    %c16_i32 = arith.constant 16 : i32
    %c0_i32 = arith.constant 0 : i32
    %3 = arith.cmpi eq, %c16_i32, %c0_i32 : i32
    %c1_i32 = arith.constant 1 : i32
    %4 = arith.select %3, %c1_i32, %c16_i32 : i32
    %5 = vector.broadcast %4 : i32 to vector<128x1xi32>
    %6 = arith.remsi %2, %5 : vector<128x1xi32>
    %c0_i32_1 = arith.constant 0 : i32
    %7 = vector.broadcast %c0_i32_1 : i32 to vector<128x1xi32>
    %8 = arith.cmpi ne, %6, %7 : vector<128x1xi32>
    %c0_i32_2 = arith.constant 0 : i32
    %9 = vector.broadcast %c0_i32_2 : i32 to vector<128x1xi32>
    %10 = arith.cmpi slt, %6, %9 : vector<128x1xi32>
    %c0_i32_3 = arith.constant 0 : i32
    %11 = arith.cmpi slt, %4, %c0_i32_3 : i32
    %12 = vector.broadcast %11 : i1 to vector<128x1xi1>
    %13 = vector.broadcast %12 : vector<128x1xi1> to vector<128x1xi1>
    %14 = arith.xori %10, %13 : vector<128x1xi1>
    %15 = arith.andi %14, %8 : vector<128x1xi1>
    %16 = vector.broadcast %4 : i32 to vector<128x1xi32>
    %17 = arith.addi %6, %16 : vector<128x1xi32>
    %18 = arith.select %15, %17, %6 : vector<128x1xi1>, vector<128x1xi32>
    %19 = arith.sitofp %18 : vector<128x1xi32> to vector<128x1xf32>
    %20 = vector.broadcast %19 : vector<128x1xf32> to vector<128x128xf32>
    %21 = arith.mulf %1, %20 : vector<128x128xf32>
    %22 = vector.extract_strided_slice %21 {offsets = [0, 0], sizes = [32, 128], strides = [1, 1]} : vector<128x128xf32> to vector<32x128xf32>
    %cst = arith.constant dense<0.000000e+00> : vector<128xf32>
    %23 = vector.multi_reduction <add>, %22, %cst [0] : vector<32x128xf32> to vector<128xf32>
    %24 = vector.shape_cast %23 : vector<128xf32> to vector<1x128xf32>
    %c0_4 = arith.constant 0 : index
    %c0_5 = arith.constant 0 : index
    %25 = vector.load %arg2[%c0_4, %c0_5] : memref<1x128xf32, #tpu.memory_space<vmem>>, vector<1x128xf32>
    tpu.vector_store %arg2[%c0_4, %c0_5], %24 {strides = array<i32>} : memref<1x128xf32, #tpu.memory_space<vmem>>, vector<1x128xf32>,
    %26 = vector.extract_strided_slice %21 {offsets = [32, 0], sizes = [32, 128], strides = [1, 1]} : vector<128x128xf32> to vector<32x128xf32>
    %cst_6 = arith.constant dense<0.000000e+00> : vector<128xf32>
    %27 = vector.multi_reduction <add>, %26, %cst_6 [0] : vector<32x128xf32> to vector<128xf32>
    %28 = vector.shape_cast %27 : vector<128xf32> to vector<1x128xf32>
    %c0_7 = arith.constant 0 : index
    %c0_8 = arith.constant 0 : index
    %29 = vector.load %arg3[%c0_7, %c0_8] : memref<1x128xf32, #tpu.memory_space<vmem>>, vector<1x128xf32>
    tpu.vector_store %arg3[%c0_7, %c0_8], %28 {strides = array<i32>} : memref<1x128xf32, #tpu.memory_space<vmem>>, vector<1x128xf32>,
    %30 = vector.extract_strided_slice %21 {offsets = [64, 0], sizes = [32, 128], strides = [1, 1]} : vector<128x128xf32> to vector<32x128xf32>
    %cst_9 = arith.constant dense<0.000000e+00> : vector<128xf32>
    %31 = vector.multi_reduction <add>, %30, %cst_9 [0] : vector<32x128xf32> to vector<128xf32>
    %32 = vector.shape_cast %31 : vector<128xf32> to vector<1x128xf32>
    %c0_10 = arith.constant 0 : index
    %c0_11 = arith.constant 0 : index
    %33 = vector.load %arg4[%c0_10, %c0_11] : memref<1x128xf32, #tpu.memory_space<vmem>>, vector<1x128xf32>
    tpu.vector_store %arg4[%c0_10, %c0_11], %32 {strides = array<i32>} : memref<1x128xf32, #tpu.memory_space<vmem>>, vector<1x128xf32>,
    %34 = vector.extract_strided_slice %21 {offsets = [96, 0], sizes = [32, 128], strides = [1, 1]} : vector<128x128xf32> to vector<32x128xf32>
    %cst_12 = arith.constant dense<0.000000e+00> : vector<128xf32>
    %35 = vector.multi_reduction <add>, %34, %cst_12 [0] : vector<32x128xf32> to vector<128xf32>
    %36 = vector.shape_cast %35 : vector<128xf32> to vector<1x128xf32>
    %c0_13 = arith.constant 0 : index
    %c0_14 = arith.constant 0 : index
    %37 = vector.load %arg5[%c0_13, %c0_14] : memref<1x128xf32, #tpu.memory_space<vmem>>, vector<1x128xf32>
    tpu.vector_store %arg5[%c0_13, %c0_14], %36 {strides = array<i32>} : memref<1x128xf32, #tpu.memory_space<vmem>>, vector<1x128xf32>,
    return
  }
  func.func @transform_0(%arg0: i32) -> (i32, i32) {
    %c0_i32 = arith.constant 0 : i32
    %c0_i32_0 = arith.constant 0 : i32
    return %arg0, %c0_i32 : i32, i32
  }
  func.func @transform_1(%arg0: i32) -> (i32, i32) {
    %c0_i32 = arith.constant 0 : i32
    %c0_i32_0 = arith.constant 0 : i32
    return %c0_i32, %arg0 : i32, i32
  }
  func.func @transform_2(%arg0: i32) -> (i32, i32) {
    %c0_i32 = arith.constant 0 : i32
    %c0_i32_0 = arith.constant 0 : i32
    return %c0_i32, %arg0 : i32, i32
  }
  func.func @transform_3(%arg0: i32) -> (i32, i32) {
    %c0_i32 = arith.constant 0 : i32
    %c0_i32_0 = arith.constant 0 : i32
    return %c0_i32, %arg0 : i32, i32
  }
  func.func @transform_4(%arg0: i32) -> (i32, i32) {
    %c0_i32 = arith.constant 0 : i32
    %c0_i32_0 = arith.constant 0 : i32
    return %c0_i32, %arg0 : i32, i32
  }
}

</mosaic_0001>

<bundles_post_ra>
// kernel: tpu_custom_call.1
= control target key start
LH: loop header
LB: loop body
LE: loop exit
PB: predicated region body
PF: predicated region fallthrough
CT: control target
= control target key end

     0   :  { %10 = vsyncpa [#allocation3], 0  ;;  %s649_s0 = inlined_call_operand.hbm [shape: f32[2,128], index: 0, kind: input, shape index: {}]   ;;  %s650_s1 = inlined_call_operand.hbm [shape: f32[1,128], index: 1, kind: output, shape index: {0}]   ;;  %s651_s2 = inlined_call_operand.hbm [shape: f32[1,128], index: 2, kind: output, shape index: {1}]   ;;  %s652_s3 = inlined_call_operand.hbm [shape: f32[1,128], index: 3, kind: output, shape index: {2}]   ;;  %s653_s4 = inlined_call_operand.hbm [shape: f32[1,128], index: 4, kind: output, shape index: {3}]  }
   0x1   :  { %11 = vsyncpa [#allocation4], 0 }
   0x2   :  { %12 = vsyncpa [#allocation7], 0 }
   0x3   :  { %13 = vsyncpa [#allocation10], 0 }
   0x4   :  { %18 = vsyncadd [#allocation3], 2016  ;;  %s539_s15 = smov [#allocation2]   ;;  %s421_s19 = scalar_lea.hbm %s649_s0, 32 }
   0x5   :  { %s19_s16 = sshll.u32 %s539_s15, 4  ;;  %p422_p0 = scmp.ne.s32.totalorder %s649_s0, %s421_s19  ;;  %s20_s16 = int_to_ptr.vmem [resolvable:$true] %s19_s16 }
   0x6   :  { %p425_p1 = scmp.lt.u32.totalorder %s421_s19, %s649_s0 }
   0x8   :  { %p427_p2 = pnand %p425_p1, %p422_p0 }
   0xa   :  { %430 = shalt.err (!%p427_p2)
}
   0xb   :  { %s431_s24 = scalar_lea.vmem %s20_s16, 32  ;;  %s435_s25 = scalar_lea.vmem %s20_s16, 2048 }
   0xc   :  { %p432_p3 = scmp.ne.s32.totalorder %s20_s16, %s431_s24  ;;  %p436_p4 = scmp.lt.s32.totalorder %s20_s16, %s20_s16 }
   0xd   :  { %p437_p5 = scmp.lt.s32.totalorder %s435_s25, %s431_s24 }
   0xf   :  { %p438_p6 = por %p437_p5, %p436_p4 }
  0x11   :  { %p439_p7 = pnand %p438_p6, %p432_p3 }
  0x13   :  { %442 = shalt.err (!%p439_p7)
}
  0x14   :  { %s540_s26 = smov 32   ;;  %s541_s27 = smov 2  }
  0x15   :  { %25 = dma.hbm_to_vmem [thread:$0]  %s649_s0, 32, %s20_s16, [#allocation3], %s540_s26, %s540_s26, %s541_s27  }
  0x16   :  { %531 = dma.done.wait [#allocation3], 2048  }
  0x17   :  { %532 = vsyncadd [#allocation3], 4294965248  ;;  %v29_v0 = vld [vmem:[#allocation2] sm:$0xff]  ;;  %v30_v1 = vld [vmem:[#allocation2 + $0x8] sm:$0xff]  ;;  %v77_v16 = vlaneseq  ;;  %s542_s0 = smov [#allocation5]  }
  0x18   :  { %45 = vxpose.xlu0.b32.start [1/16] %v29_v0, 128  ;;  %v31_v2 = vld [vmem:[#allocation2 + $0x10] sm:$0xff]  ;;  %v32_v3 = vld [vmem:[#allocation2 + $0x18] sm:$0xff]  ;;  %v33_v4 = vld [vmem:[#allocation2 + $0x20] sm:$0xff]  ;;  %s364_s30 = sshll.u32 %s542_s0, 4  ;;  %s365_s30 = int_to_ptr.vmem [resolvable:$true] %s364_s30 }
  0x19   :  { %v34_v5 = vld [vmem:[#allocation2 + $0x28] sm:$0xff]  ;;  %v35_v6 = vld [vmem:[#allocation2 + $0x30] sm:$0xff]  ;;  %v36_v7 = vld [vmem:[#allocation2 + $0x38] sm:$0xff]  ;;  %v583_v17 = vshrl.u32 %v77_v16, 7  ;;  %s443_s5 = scalar_lea.vmem %s365_s30, 16  ;;  %s447_s6 = scalar_lea.vmem %s365_s30, 32 }
  0x1a   :  { %v37_v8 = vld [vmem:[#allocation2 + $0x40] sm:$0xff]  ;;  %v38_v9 = vld [vmem:[#allocation2 + $0x48] sm:$0xff]  ;;  %v39_v10 = vld [vmem:[#allocation2 + $0x50] sm:$0xff]  ;;  %p444_p8 = scmp.ne.s32.totalorder %s365_s30, %s443_s5  ;;  %p448_p9 = scmp.lt.s32.totalorder %s365_s30, %s365_s30 }
  0x1b   :  { %v40_v11 = vld [vmem:[#allocation2 + $0x58] sm:$0xff]  ;;  %v41_v12 = vld [vmem:[#allocation2 + $0x60] sm:$0xff]  ;;  %v42_v13 = vld [vmem:[#allocation2 + $0x68] sm:$0xff]  ;;  %v79_v18 = vadd.s32 8, %v583_v17  ;;  %v80_v19 = vadd.s32 16, %v583_v17  ;;  %v98_v22 = vand.u32 15, %v583_v17  ;;  %p449_p10 = scmp.lt.s32.totalorder %s447_s6, %s443_s5 }
  0x1c   :  { %46 = vxpose.xlu0.b32.cont [2/16] %v30_v1, 128  ;;  %v43_v14 = vld [vmem:[#allocation2 + $0x70] sm:$0xff]  ;;  %v44_v15 = vld [vmem:[#allocation2 + $0x78] sm:$0xff]  ;;  %v81_v24 = vadd.s32 24, %v583_v17  ;;  %v83_v36 = vadd.s32 40, %v583_v17  ;;  %v82_v40 = vadd.s32 32, %v583_v17  ;;  %v84_v41 = vadd.s32 48, %v583_v17 }
  0x1d   :  { %v105_v20 = vand.u32 15, %v79_v18  ;;  %v112_v23 = vand.u32 15, %v80_v19  ;;  %v286_v27 = vcvt.s32.f32 %v98_v22  ;;  %v85_v48 = vadd.s32 56, %v583_v17  ;;  %p450_p11 = por %p449_p10, %p448_p9 }
  0x1e   :  { %v119_v29 = vand.u32 15, %v81_v24  ;;  %v133_v43 = vand.u32 15, %v83_v36  ;;  %v126_v46 = vand.u32 15, %v82_v40  ;;  %v140_v47 = vand.u32 15, %v84_v41 }
  0x1f   :  { %v287_v25 = vcvt.s32.f32 %v105_v20  ;;  %v288_v28 = vcvt.s32.f32 %v112_v23  ;;  %v147_v55 = vand.u32 15, %v85_v48  ;;  %v87_v0 = vadd.s32 72, %v583_v17  ;;  %p451_p12 = pnand %p450_p11, %p444_p8 }
  0x20   :  { %47 = vxpose.xlu0.b32.cont [3/16] %v31_v2, 128  ;;  %v289_v34 = vcvt.s32.f32 %v119_v29  ;;  %v291_v50 = vcvt.s32.f32 %v133_v43  ;;  %v290_v53 = vcvt.s32.f32 %v126_v46  ;;  %v292_v54 = vcvt.s32.f32 %v140_v47 }
  0x21   :  { %v293_v61 = vcvt.s32.f32 %v147_v55 }
  0x24   :  { %48 = vxpose.xlu0.b32.cont [4/16] %v32_v3, 128 }
  0x28   :  { %49 = vxpose.xlu0.b32.cont [5/16] %v33_v4, 128 }
  0x2c   :  { %50 = vxpose.xlu0.b32.cont [6/16] %v34_v5, 128  ;;  %v86_v5 = vadd.s32 64, %v583_v17 }
  0x30   :  { %51 = vxpose.xlu0.b32.cont [7/16] %v35_v6, 128  ;;  %v88_v6 = vadd.s32 80, %v583_v17 }
  0x34   :  { %52 = vxpose.xlu0.b32.cont [8/16] %v36_v7, 128 }
  0x38   :  { %53 = vxpose.xlu0.b32.cont [9/16] %v37_v8, 128 }
  0x3c   :  { %54 = vxpose.xlu0.b32.cont [10/16] %v38_v9, 128 }
  0x40   :  { %55 = vxpose.xlu0.b32.cont [11/16] %v39_v10, 128 }
  0x44   :  { %56 = vxpose.xlu0.b32.cont [12/16] %v40_v11, 128 }
  0x48   :  { %57 = vxpose.xlu0.b32.cont [13/16] %v41_v12, 128 }
  0x4c   :  { %58 = vxpose.xlu0.b32.cont [14/16] %v42_v13, 128 }
  0x50   :  { %59 = vxpose.xlu0.b32.cont [15/16] %v43_v14, 128 }
  0x54   :  { %60 = vxpose.xlu0.b32.end [16/16] %v44_v15, 128 }
  0x98   :  { %v61_v21 = vpop.trf.xlu0 }
  0x99   :  { %v302_v32 = vmul.f32 %v286_v27, %v61_v21 }
  0x9c   :  { %v62_v26 = vpop.trf.xlu0 }
  0x9d   :  { %v303_v30 = vmul.f32 %v287_v25, %v62_v26 }
  0x9f   :  { %v318_v35 = vadd.f32 %v303_v30, %v302_v32 }
  0xa0   :  { %v63_v31 = vpop.trf.xlu0 }
  0xa1   :  { %v304_v33 = vmul.f32 %v288_v28, %v63_v31 }
  0xa3   :  { %v319_v38 = vadd.f32 %v318_v35, %v304_v33 }
  0xa4   :  { %v64_v37 = vpop.trf.xlu0 }
  0xa5   :  { %v305_v39 = vmul.f32 %v289_v34, %v64_v37 }
  0xa7   :  { %v320_v42 = vadd.f32 %v319_v38, %v305_v39 }
  0xa8   :  { %v65_v44 = vpop.trf.xlu0 }
  0xa9   :  { %v321_v45 = vrot.slane %v320_v42, 4  ;;  %v306_v59 = vmul.f32 %v290_v53, %v65_v44 }
  0xab   :  { %v322_v49 = vadd.f32 %v321_v45, %v320_v42 }
  0xac   :  { %v66_v51 = vpop.trf.xlu0 }
  0xad   :  { %v323_v52 = vrot.slane %v322_v49, 2  ;;  %v307_v56 = vmul.f32 %v291_v50, %v66_v51 }
  0xaf   :  { %v324_v57 = vadd.f32 %v323_v52, %v322_v49  ;;  %v328_v63 = vadd.f32 %v307_v56, %v306_v59 }
  0xb0   :  { %v67_v58 = vpop.trf.xlu0 }
  0xb1   :  { %v308_v60 = vmul.f32 %v292_v54, %v67_v58  ;;  %v325_v62 = vrot.slane %v324_v57, 1 }
  0xb3   :  { %v326_v1 = vadd.f32 %v325_v62, %v324_v57  ;;  %v329_v3 = vadd.f32 %v328_v63, %v308_v60 }
  0xb4   :  { %v68_v2 = vpop.trf.xlu0 }
  0xb5   :  { %v309_v4 = vmul.f32 %v293_v61, %v68_v2  ;;  %327 = vst [vmem:[#allocation5] sm:$0x1] %v326_v1 }
  0xb6   :  { %454 = shalt.err (!%p451_p12)
}
  0xb7   :  { %s455_s9 = scalar_lea.hbm %s650_s1, 16 }
  0xb8   :  { %p456_p13 = scmp.ne.s32.totalorder %s650_s1, %s455_s9  ;;  %p459_p0 = scmp.lt.u32.totalorder %s455_s9, %s650_s1 }
  0xba   :  { %p461_p1 = pnand %p459_p0, %p456_p13 }
  0xbc   :  { %464 = shalt.err (!%p461_p1)
}
  0xbd   :  { %367 = dma.vmem_to_hbm [thread:$0]  %s365_s30, 16, %s650_s1, [#allocation4]   ;;  %v330_v7 = vadd.f32 %v329_v3, %v309_v4  ;;  %v161_v8 = vand.u32 15, %v87_v0  ;;  %v69_v9 = vpop.trf.xlu0  ;;  %v154_v11 = vand.u32 15, %v86_v5  ;;  %v168_v12 = vand.u32 15, %v88_v6 }
  0xbe   :  { %v89_v13 = vadd.s32 88, %v583_v17  ;;  %s543_s16 = smov [#allocation6]   ;;  %v91_v30 = vadd.s32 104, %v583_v17  ;;  %v90_v35 = vadd.s32 96, %v583_v17  ;;  %v92_v36 = vadd.s32 112, %v583_v17 }
  0xbf   :  { %v331_v10 = vrot.slane %v330_v7, 4  ;;  %v295_v15 = vcvt.s32.f32 %v161_v8  ;;  %v294_v19 = vcvt.s32.f32 %v154_v11  ;;  %v296_v20 = vcvt.s32.f32 %v168_v12  ;;  %s374_s1 = sshll.u32 %s543_s16, 4  ;;  %s375_s1 = int_to_ptr.vmem [resolvable:$true] %s374_s1 }
  0xc0   :  { %v175_v21 = vand.u32 15, %v89_v13  ;;  %s465_s17 = scalar_lea.vmem %s375_s1, 16  ;;  %s469_s18 = scalar_lea.vmem %s375_s1, 32 }
  0xc1   :  { %v332_v14 = vadd.f32 %v331_v10, %v330_v7  ;;  %v70_v16 = vpop.trf.xlu0  ;;  %v310_v25 = vmul.f32 %v294_v19, %v69_v9  ;;  %p466_p2 = scmp.ne.s32.totalorder %s375_s1, %s465_s17  ;;  %p470_p3 = scmp.lt.s32.totalorder %s375_s1, %s375_s1 }
  0xc2   :  { %v311_v22 = vmul.f32 %v295_v15, %v70_v16  ;;  %v297_v27 = vcvt.s32.f32 %v175_v21  ;;  %p471_p4 = scmp.lt.s32.totalorder %s469_s18, %s465_s17 }
  0xc3   :  { %v333_v18 = vrot.slane %v332_v14, 2 }
  0xc4   :  { %v338_v29 = vadd.f32 %v311_v22, %v310_v25  ;;  %p472_p5 = por %p471_p4, %p470_p3 }
  0xc5   :  { %v334_v23 = vadd.f32 %v333_v18, %v332_v14  ;;  %v71_v24 = vpop.trf.xlu0 }
  0xc6   :  { %v312_v26 = vmul.f32 %v296_v20, %v71_v24  ;;  %p473_p6 = pnand %p472_p5, %p466_p2 }
  0xc7   :  { %v335_v28 = vrot.slane %v334_v23, 1 }
  0xc8   :  { %v339_v33 = vadd.f32 %v338_v29, %v312_v26 }
  0xc9   :  { %v336_v31 = vadd.f32 %v335_v28, %v334_v23  ;;  %v72_v32 = vpop.trf.xlu0 }
  0xca   :  { %v313_v34 = vmul.f32 %v297_v27, %v72_v32 }
  0xcb   :  { %337 = vst [vmem:[#allocation6] sm:$0x1] %v336_v31 }
  0xcc   :  { %476 = shalt.err (!%p473_p6)
}
  0xcd   :  { %s477_s21 = scalar_lea.hbm %s651_s2, 16 }
  0xce   :  { %p478_p7 = scmp.ne.s32.totalorder %s651_s2, %s477_s21  ;;  %p481_p8 = scmp.lt.u32.totalorder %s477_s21, %s651_s2 }
  0xd0   :  { %p483_p9 = pnand %p481_p8, %p478_p7 }
  0xd2   :  { %486 = shalt.err (!%p483_p9)
}
  0xd3   :  { %377 = dma.vmem_to_hbm [thread:$0]  %s375_s1, 16, %s651_s2, [#allocation7]   ;;  %v340_v37 = vadd.f32 %v339_v33, %v313_v34  ;;  %v189_v38 = vand.u32 15, %v91_v30  ;;  %v73_v39 = vpop.trf.xlu0  ;;  %v182_v41 = vand.u32 15, %v90_v35  ;;  %v196_v42 = vand.u32 15, %v92_v36 }
  0xd4   :  { %v93_v43 = vadd.s32 120, %v583_v17  ;;  %s544_s28 = smov [#allocation8]  }
  0xd5   :  { %v341_v40 = vrot.slane %v340_v37, 4  ;;  %v299_v45 = vcvt.s32.f32 %v189_v38  ;;  %v298_v48 = vcvt.s32.f32 %v182_v41  ;;  %v300_v49 = vcvt.s32.f32 %v196_v42  ;;  %s384_s2 = sshll.u32 %s544_s28, 4  ;;  %s385_s2 = int_to_ptr.vmem [resolvable:$true] %s384_s2 }
  0xd6   :  { %v203_v50 = vand.u32 15, %v93_v43  ;;  %s487_s29 = scalar_lea.vmem %s385_s2, 16  ;;  %s491_s0 = scalar_lea.vmem %s385_s2, 32 }
  0xd7   :  { %v342_v44 = vadd.f32 %v341_v40, %v340_v37  ;;  %v74_v46 = vpop.trf.xlu0  ;;  %v314_v54 = vmul.f32 %v298_v48, %v73_v39  ;;  %p488_p10 = scmp.ne.s32.totalorder %s385_s2, %s487_s29  ;;  %p492_p11 = scmp.lt.s32.totalorder %s385_s2, %s385_s2 }
  0xd8   :  { %v315_v52 = vmul.f32 %v299_v45, %v74_v46  ;;  %v301_v56 = vcvt.s32.f32 %v203_v50  ;;  %p493_p12 = scmp.lt.s32.totalorder %s491_s0, %s487_s29 }
  0xd9   :  { %v343_v47 = vrot.slane %v342_v44, 2 }
  0xda   :  { %v348_v58 = vadd.f32 %v315_v52, %v314_v54  ;;  %p494_p13 = por %p493_p12, %p492_p11 }
  0xdb   :  { %v344_v51 = vadd.f32 %v343_v47, %v342_v44  ;;  %v75_v53 = vpop.trf.xlu0 }
  0xdc   :  { %v316_v55 = vmul.f32 %v300_v49, %v75_v53  ;;  %p495_p0 = pnand %p494_p13, %p488_p10 }
  0xdd   :  { %v345_v57 = vrot.slane %v344_v51, 1 }
  0xde   :  { %v349_v60 = vadd.f32 %v348_v58, %v316_v55 }
  0xdf   :  { %v346_v59 = vadd.f32 %v345_v57, %v344_v51  ;;  %v76_v17 = vpop.trf.xlu0 }
  0xe0   :  { %v317_v61 = vmul.f32 %v301_v56, %v76_v17 }
  0xe1   :  { %347 = vst [vmem:[#allocation8] sm:$0x1] %v346_v59 }
  0xe2   :  { %498 = shalt.err (!%p495_p0)
}
  0xe3   :  { %s499_s6 = scalar_lea.hbm %s652_s3, 16 }
  0xe4   :  { %p500_p1 = scmp.ne.s32.totalorder %s652_s3, %s499_s6  ;;  %p503_p2 = scmp.lt.u32.totalorder %s499_s6, %s652_s3 }
  0xe6   :  { %p505_p3 = pnand %p503_p2, %p500_p1 }
  0xe8   :  { %508 = shalt.err (!%p505_p3)
}
  0xe9   :  { %387 = dma.vmem_to_hbm [thread:$0]  %s385_s2, 16, %s652_s3, [#allocation7]   ;;  %v350_v62 = vadd.f32 %v349_v60, %v317_v61 }
  0xea   :  { %s545_s13 = smov [#allocation9]  }
  0xeb   :  { %v351_v63 = vrot.slane %v350_v62, 4  ;;  %s394_s14 = sshll.u32 %s545_s13, 4  ;;  %s395_s14 = int_to_ptr.vmem [resolvable:$true] %s394_s14 }
  0xec   :  { %s509_s15 = scalar_lea.vmem %s395_s14, 16  ;;  %s513_s16 = scalar_lea.vmem %s395_s14, 32 }
  0xed   :  { %v352_v0 = vadd.f32 %v351_v63, %v350_v62  ;;  %p510_p4 = scmp.ne.s32.totalorder %s395_s14, %s509_s15  ;;  %p514_p5 = scmp.lt.s32.totalorder %s395_s14, %s395_s14 }
  0xee   :  { %p515_p6 = scmp.lt.s32.totalorder %s513_s16, %s509_s15 }
  0xef   :  { %v353_v1 = vrot.slane %v352_v0, 2 }
  0xf0   :  { %p516_p7 = por %p515_p6, %p514_p5 }
  0xf1   :  { %v354_v2 = vadd.f32 %v353_v1, %v352_v0 }
  0xf2   :  { %p517_p8 = pnand %p516_p7, %p510_p4 }
  0xf3   :  { %v355_v3 = vrot.slane %v354_v2, 1 }
  0xf5   :  { %v356_v4 = vadd.f32 %v355_v3, %v354_v2 }
  0xf7   :  { %357 = vst [vmem:[#allocation9] sm:$0x1] %v356_v4 }
  0xf8   :  { %520 = shalt.err (!%p517_p8)
}
  0xf9   :  { %s521_s17 = scalar_lea.hbm %s653_s4, 16 }
  0xfa   :  { %p522_p9 = scmp.ne.s32.totalorder %s653_s4, %s521_s17  ;;  %p525_p10 = scmp.lt.u32.totalorder %s521_s17, %s653_s4 }
  0xfc   :  { %p527_p11 = pnand %p525_p10, %p522_p9 }
  0xfe   :  { %530 = shalt.err (!%p527_p11)
}
  0xff   :  { %397 = dma.vmem_to_hbm [thread:$0]  %s395_s14, 16, %s653_s4, [#allocation10]  }
 0x100   :  { %533 = dma.done.wait [#allocation4], 16  }
 0x101   :  { %534 = vsyncadd [#allocation4], 4294967280 }
 0x102   :  { %535 = dma.done.wait [#allocation7], 32  }
 0x103   :  { %536 = vsyncadd [#allocation7], 4294967264 }
 0x104   :  { %537 = dma.done.wait [#allocation10], 16  }
 0x105   :  { %538 = vsyncadd [#allocation10], 4294967280 }
 0x106   :  { %410 = vsyncpa [#allocation3], 1 }
 0x107   :  { %411 = vsyncpa [#allocation4], 1 }
 0x108   :  { %412 = vsyncpa [#allocation7], 1 }
 0x109   :  { %413 = vsyncpa [#allocation10], 1 }

</bundles_post_ra>
